<compile_context>
chip_gen: v5e
topology: v5e:2x2
jax: 0.10.0
libtpu: 0.0.40
codegen_flags: <defaults>
</compile_context>

<pallas_src>
import functools

import jax
import jax.numpy as jnp
from jax import lax
from jax.experimental import pallas as pl
from jax.experimental.pallas import tpu as pltpu


# ----------------------------------------------------------------------------
# Kernels
# ----------------------------------------------------------------------------

def _partial_block(partial):
    """Place a scalar partial sum at [0, 0] of a lane-dense (8, 128) f32 block."""
    r = lax.broadcasted_iota(jnp.int32, (8, 128), 0)
    c = lax.broadcasted_iota(jnp.int32, (8, 128), 1)
    return jnp.where((r == 0) & (c == 0), partial, 0.0).astype(jnp.float32)


def _clipped_masked_sum(sq, block_b, batch_size):
    """clamp(., 1e-12, 1e12) per row, zero OOB tail rows, reduce to a scalar."""
    sq = jnp.clip(sq, 1e-12, 1e12)                     # torch .clamp(1e-12, 1e12)
    row = (pl.program_id(0) * block_b
           + lax.broadcasted_iota(jnp.int32, sq.shape, 0))
    # Mask AFTER the clip: OOB tail rows may hold NaN/Inf garbage; the select
    # discards them regardless of what the arithmetic produced.
    return jnp.sum(jnp.where(row < batch_size, sq, 0.0))


def center_loss_fused_kernel(x_ref, lab_ref, centers_ref, out_ref, *,
                             batch_size, block_b, num_classes):
    """One batch tile, gather fused in-kernel.

    The labelled center rows are selected via a one-hot matmul on the MXU
    (idle in this HBM-bound kernel); ||x - c||^2 runs on the VPU; the clamped
    masked partial sum is written into one lane-dense (8, 128) output block.
    """
    x = x_ref[...].astype(jnp.float32)                 # (TB, D) upcast in-vreg
    centers = centers_ref[...].astype(jnp.float32)     # (C, D) resident table
    labels = lab_ref[...]                              # (TB, 1) int32

    cls = lax.broadcasted_iota(jnp.int32, (block_b, num_classes), 1)
    one_hot = (labels == cls).astype(jnp.float32)      # (TB, C) exact 0/1 mask
    c_rows = jnp.dot(one_hot, centers,
                     preferred_element_type=jnp.float32)   # (TB, D) gather

    diff = x - c_rows                                  # (TB, D) f32, VPU
    sq = jnp.sum(diff * diff, axis=1, keepdims=True)   # (TB, 1)
    out_ref[...] = _partial_block(_clipped_masked_sum(sq, block_b, batch_size))


def center_loss_pregathered_kernel(x_ref, cg_ref, out_ref, *,
                                   batch_size, block_b):
    """Fallback for huge C*D tables: centers were gathered in the wrapper."""
    diff = x_ref[...].astype(jnp.float32) - cg_ref[...].astype(jnp.float32)
    sq = jnp.sum(diff * diff, axis=1, keepdims=True)
    out_ref[...] = _partial_block(_clipped_masked_sum(sq, block_b, batch_size))


# ----------------------------------------------------------------------------
# Wrapper
# ----------------------------------------------------------------------------

def _round_up(n, m):
    return ((n + m - 1) // m) * m


def _sublane_multiple(dtype):
    # (8,128) tiles for 32-bit, (16,128) for 16-bit, (32,128) for 8-bit.
    return max(8, 32 // jnp.dtype(dtype).itemsize)


def center_loss(x, centers, labels, *,
                target_tile_bytes=2 << 20,       # ~85%+ HBM roofline tile size
                vmem_budget_bytes=24 << 20,      # headroom under 32 MiB limit
                max_resident_center_bytes=8 << 20):
    """x: (B, D), centers: (C, D), labels: (B,) int -> scalar f32 loss."""
    B, D = x.shape
    C, Dc = centers.shape
    assert D == Dc, (x.shape, centers.shape)

    labels2d = labels.astype(jnp.int32).reshape(B, 1)
    x_isz = jnp.dtype(x.dtype).itemsize
    c_isz = jnp.dtype(centers.dtype).itemsize

    # Option A (default): the whole (C, D) centers table stays resident in
    # VMEM and the gather happens in-kernel.  Only huge tables fall back.
    centers_bytes = C * D * c_isz
    fuse_gather = centers_bytes <= max_resident_center_bytes

    # ---- batch-tile sizing: byte budget, not a fixed row count -------------
    mult = _sublane_multiple(x.dtype)
    if fuse_gather:
        per_row_bytes = D * x_isz + 4                # x row + int32 label
    else:
        mult = max(mult, _sublane_multiple(centers.dtype))
        per_row_bytes = D * (x_isz + c_isz)          # x row + gathered-center row

    tb = max(mult, (target_tile_bytes // (D * x_isz)) // mult * mult)
    resident = 2 * centers_bytes if fuse_gather else 0   # conservative: 2 bufs
    avail = max(vmem_budget_bytes - resident, 2 << 20)
    tb = min(tb, max(mult, (avail // (2 * per_row_bytes)) // mult * mult))
    if tb >= B:
        if B > mult:
            # v7x: give the "parallel" axis >= 2 steps so both TCs get work.
            tb = _round_up(pl.cdiv(B, 2), mult)      # always < B in this branch
        else:
            tb = B                                   # single full-batch tile
    num_tiles = pl.cdiv(B, tb)
    out_rows = num_tiles * 8

    out_shape = jax.ShapeDtypeStruct((out_rows, 128), jnp.float32)
    out_spec = pl.BlockSpec((8, 128), lambda i: (i, 0))
    compiler_params = pltpu.CompilerParams(
        dimension_semantics=("parallel",),
        vmem_limit_bytes=32 << 20)

    if fuse_gather:
        kernel = functools.partial(center_loss_fused_kernel,
                                   batch_size=B, block_b=tb, num_classes=C)
        cost = pl.CostEstimate(
            flops=int(B * (2 * C * D + 4 * D + C)),
            transcendentals=0,
            bytes_accessed=int(B * D * x_isz + centers_bytes + B * 4
                               + out_rows * 128 * 4))
        partials = pl.pallas_call(
            kernel,
            out_shape=out_shape,
            grid=(num_tiles,),
            in_specs=[
                pl.BlockSpec((tb, D), lambda i: (i, 0)),   # x batch tile
                pl.BlockSpec((tb, 1), lambda i: (i, 0)),   # labels tile (int32)
                pl.BlockSpec((C, D), lambda i: (0, 0)),    # resident centers
            ],
            out_specs=out_spec,
            compiler_params=compiler_params,
            cost_estimate=cost,
        )(x, labels2d, centers)
    else:
        # TODO(synk): for very large C*D, fold this gather into the kernel too:
        # scalar-prefetched labels driving double-buffered per-row
        # pltpu.make_async_copy DMAs from an HBM-resident (pl.ANY) centers
        # table.  The wrapper gather below costs one extra B*D HBM round trip.
        c_gathered = jnp.take(centers, labels.astype(jnp.int32), axis=0)
        kernel = functools.partial(center_loss_pregathered_kernel,
                                   batch_size=B, block_b=tb)
        cost = pl.CostEstimate(
            flops=int(4 * B * D),
            transcendentals=0,
            bytes_accessed=int(B * D * (x_isz + c_isz) + out_rows * 128 * 4))
        partials = pl.pallas_call(
            kernel,
            out_shape=out_shape,
            grid=(num_tiles,),
            in_specs=[
                pl.BlockSpec((tb, D), lambda i: (i, 0)),
                pl.BlockSpec((tb, D), lambda i: (i, 0)),
            ],
            out_specs=out_spec,
            compiler_params=compiler_params,
            cost_estimate=cost,
        )(x, c_gathered)

    # Every element except each tile's [0, 0] is zero, so a plain sum finishes
    # the reduction; divide by the true batch size for the mean.
    return jnp.sum(partials) / jnp.float32(B)


# ----------------------------------------------------------------------------
# Self-test
# ----------------------------------------------------------------------------

if __name__ == "__main__":
    key = jax.random.PRNGKey(0)

    def reference(x, centers, labels):
        # Pure-JAX reference mirroring the PyTorch expansion form.
        xf = x.astype(jnp.float32)
        cf = centers.astype(jnp.float32)
        distmat = (jnp.sum(xf * xf, axis=1, keepdims=True)
                   + jnp.sum(cf * cf, axis=1)[None, :]
                   - 2.0 * xf @ cf.T)
        picked = distmat[jnp.arange(x.shape[0]), labels]
        return jnp.mean(jnp.clip(picked, 1e-12, 1e12))

    # Config 1: CenterLoss(num_classes=16, feat_dim=128), batch of 8, f32.
    k1, k2, k3, key = jax.random.split(key, 4)
    x1 = jax.random.normal(k1, (8, 128), dtype=jnp.float32)
    c1 = jax.random.normal(k2, (16, 128), dtype=jnp.float32)   # torch.randn init
    l1 = jax.random.randint(k3, (8,), 0, 16, dtype=jnp.int32)

    loss1 = jax.block_until_ready(center_loss(x1, c1, l1))
    ref1 = reference(x1, c1, l1)
    assert jnp.allclose(loss1, ref1, rtol=1e-4, atol=1e-4), (loss1, ref1)

    # Config 2: bf16 activations, batch not a tile multiple (exercises the
    # in-kernel upcast, the 2-step "parallel" grid and the tail-row masking).
    k4, k5, k6, _ = jax.random.split(key, 4)
    x2 = jax.random.normal(k4, (20, 256), dtype=jnp.float32).astype(jnp.bfloat16)
    c2 = jax.random.normal(k5, (10, 256), dtype=jnp.float32)
    l2 = jax.random.randint(k6, (20,), 0, 10, dtype=jnp.int32)

    loss2 = jax.block_until_ready(center_loss(x2, c2, l2))
    ref2 = reference(x2, c2, l2)
    assert jnp.allclose(loss2, ref2, rtol=1e-3, atol=1e-3), (loss2, ref2)

    print("KERNEL_OK")
</pallas_src>

<mosaic_0001>
module attributes {stable_mosaic.version = 11 : i64} {
  func.func @center_loss_fused_kernel(%arg0: i32, %arg1: memref<8x128xf32, #tpu.memory_space<vmem>>, %arg2: memref<8x1xi32, #tpu.memory_space<vmem>>, %arg3: memref<16x128xf32, #tpu.memory_space<vmem>>, %arg4: memref<8x128xf32, #tpu.memory_space<vmem>>) attributes {dimension_semantics = [#tpu.dimension_semantics<parallel>], iteration_bounds = array<i64: 1>, scalar_prefetch = 0 : i64, scratch_operands = 0 : i64, tpu.core_type = #tpu.core_type<tc>, window_params = [{transform_indices = @transform_0, window_bounds = array<i64: 8, 128>}, {transform_indices = @transform_1, window_bounds = array<i64: 8, 1>}, {pipeline_mode = #tpu.pipeline_mode<synchronous>, transform_indices = @transform_2, window_bounds = array<i64: 16, 128>}, {transform_indices = @transform_3, window_bounds = array<i64: 8, 128>}]} {
    %c0 = arith.constant 0 : index
    %c0_0 = arith.constant 0 : index
    %0 = vector.load %arg1[%c0, %c0_0] : memref<8x128xf32, #tpu.memory_space<vmem>>, vector<8x128xf32>
    %c0_1 = arith.constant 0 : index
    %c0_2 = arith.constant 0 : index
    %1 = vector.load %arg3[%c0_1, %c0_2] : memref<16x128xf32, #tpu.memory_space<vmem>>, vector<16x128xf32>
    %c0_3 = arith.constant 0 : index
    %c0_4 = arith.constant 0 : index
    %2 = vector.load %arg2[%c0_3, %c0_4] : memref<8x1xi32, #tpu.memory_space<vmem>>, vector<8x1xi32>
    %3 = tpu.iota {dimensions = array<i32: 1>} : vector<8x16xi32>
    %4 = vector.broadcast %2 : vector<8x1xi32> to vector<8x16xi32>
    %5 = arith.cmpi eq, %4, %3 : vector<8x16xi32>
    %6 = arith.extui %5 : vector<8x16xi1> to vector<8x16xi32>
    %7 = arith.sitofp %6 : vector<8x16xi32> to vector<8x16xf32>
    %cst = arith.constant dense<0.000000e+00> : vector<8x128xf32>
    %8 = tpu.matmul %7, %1, %cst {dimension_numbers = #tpu.dot_dimension_numbers<[1], [0], [0], [1], [0, 0, 1, 1], [], []>} : vector<8x16xf32>, vector<16x128xf32>, vector<8x128xf32> -> vector<8x128xf32>
    %9 = arith.subf %0, %8 : vector<8x128xf32>
    %10 = arith.mulf %9, %9 : vector<8x128xf32>
    %cst_5 = arith.constant dense<0.000000e+00> : vector<8xf32>
    %11 = vector.multi_reduction <add>, %10, %cst_5 [1] : vector<8x128xf32> to vector<8xf32>
    %12 = vector.shape_cast %11 : vector<8xf32> to vector<8x1xf32>
    %cst_6 = arith.constant 9.99999996E-13 : f32
    %cst_7 = arith.constant 9.99999995E+11 : f32
    %13 = vector.broadcast %cst_6 : f32 to vector<8x1xf32>
    %14 = arith.maximumf %13, %12 : vector<8x1xf32>
    %15 = vector.broadcast %cst_7 : f32 to vector<8x1xf32>
    %16 = arith.minimumf %15, %14 : vector<8x1xf32>
    %c8_i32 = arith.constant 8 : i32
    %17 = arith.muli %arg0, %c8_i32 : i32
    %18 = tpu.iota {dimensions = array<i32: 0>} : vector<8x1xi32>
    %19 = vector.broadcast %17 : i32 to vector<8x1xi32>
    %20 = arith.addi %19, %18 : vector<8x1xi32>
    %c8_i32_8 = arith.constant 8 : i32
    %21 = vector.broadcast %c8_i32_8 : i32 to vector<8x1xi32>
    %22 = arith.cmpi slt, %20, %21 : vector<8x1xi32>
    %cst_9 = arith.constant 0.000000e+00 : f32
    %23 = vector.broadcast %cst_9 : f32 to vector<8x1xf32>
    %24 = arith.select %22, %16, %23 : vector<8x1xi1>, vector<8x1xf32>
    %25 = vector.shape_cast %24 : vector<8x1xf32> to vector<1x8x1xf32>
    %cst_10 = arith.constant dense<0.000000e+00> : vector<1xf32>
    %26 = vector.multi_reduction <add>, %25, %cst_10 [1, 2] : vector<1x8x1xf32> to vector<1xf32>
    %27 = vector.shape_cast %26 : vector<1xf32> to vector<1x1x1xf32>
    %28 = vector.extract %27[0, 0, 0] : f32 from vector<1x1x1xf32>
    %29 = tpu.iota {dimensions = array<i32: 0>} : vector<8x128xi32>
    %30 = tpu.iota {dimensions = array<i32: 1>} : vector<8x128xi32>
    %c0_i32 = arith.constant 0 : i32
    %31 = vector.broadcast %c0_i32 : i32 to vector<8x128xi32>
    %32 = arith.cmpi eq, %29, %31 : vector<8x128xi32>
    %c0_i32_11 = arith.constant 0 : i32
    %33 = vector.broadcast %c0_i32_11 : i32 to vector<8x128xi32>
    %34 = arith.cmpi eq, %30, %33 : vector<8x128xi32>
    %35 = arith.andi %32, %34 : vector<8x128xi1>
    %cst_12 = arith.constant 0.000000e+00 : f32
    %36 = vector.broadcast %28 : f32 to vector<8x128xf32>
    %37 = vector.broadcast %cst_12 : f32 to vector<8x128xf32>
    %38 = arith.select %35, %36, %37 : vector<8x128xi1>, vector<8x128xf32>
    %c0_13 = arith.constant 0 : index
    %c0_14 = arith.constant 0 : index
    %39 = vector.load %arg4[%c0_13, %c0_14] : memref<8x128xf32, #tpu.memory_space<vmem>>, vector<8x128xf32>
    tpu.vector_store %arg4[%c0_13, %c0_14], %38 {strides = array<i32>} : memref<8x128xf32, #tpu.memory_space<vmem>>, vector<8x128xf32>,
    return
  }
  func.func @transform_0(%arg0: i32) -> (i32, i32) {
    %c0_i32 = arith.constant 0 : i32
    %c0_i32_0 = arith.constant 0 : i32
    return %arg0, %c0_i32 : i32, i32
  }
  func.func @transform_1(%arg0: i32) -> (i32, i32) {
    %c0_i32 = arith.constant 0 : i32
    %c0_i32_0 = arith.constant 0 : i32
    return %arg0, %c0_i32 : i32, i32
  }
  func.func @transform_2(%arg0: i32) -> (i32, i32) {
    %c0_i32 = arith.constant 0 : i32
    %c0_i32_0 = arith.constant 0 : i32
    %c0_i32_1 = arith.constant 0 : i32
    return %c0_i32, %c0_i32_0 : i32, i32
  }
  func.func @transform_3(%arg0: i32) -> (i32, i32) {
    %c0_i32 = arith.constant 0 : i32
    %c0_i32_0 = arith.constant 0 : i32
    return %arg0, %c0_i32 : i32, i32
  }
}

</mosaic_0001>

<bundles_post_ra>
// kernel: tpu_custom_call.1
= control target key start
LH: loop header
LB: loop body
LE: loop exit
PB: predicated region body
PF: predicated region fallthrough
CT: control target
= control target key end

     0   :  { %8 = vsyncpa [#allocation3], 0  ;;  %s215_s0 = inlined_call_operand.vmem [shape: f32[8,128], index: 0, kind: input, shape index: {}]   ;;  %s216_s1 = inlined_call_operand.vmem [shape: s32[8,1], index: 1, kind: input, shape index: {}]   ;;  %s217_s2 = inlined_call_operand.hbm [shape: f32[16,128], index: 2, kind: input, shape index: {}]   ;;  %s218_s3 = inlined_call_operand.hbm [shape: f32[8,128], index: 3, kind: output, shape index: {}]  }
   0x1   :  { %9 = vsyncpa [#allocation4], 0  ;;  %s18_s14 = sshll.u32 %s217_s2, 4  ;;  %s177_s15 = smov [#allocation2]   ;;  %s19_s14 = int_to_ptr.hbm [resolvable:$true] %s18_s14 }
   0x2   :  { %s20_s16 = sshll.u32 %s177_s15, 4  ;;  %s178_s17 = smov 128   ;;  %s21_s16 = int_to_ptr.vmem [resolvable:$true] %s20_s16 }
   0x3   :  { %s179_s18 = smov 8  }
   0x4   :  { %26 = dma.hbm_to_vmem [thread:$0]  %s19_s14, 256, %s21_s16, [#allocation3], %s178_s17, %s178_s17, %s179_s18  }
   0x5   :  { %173 = dma.done.wait [#allocation3], 256  }
   0x6   :  { %174 = vsyncadd [#allocation3], 4294967040  ;;  %v180_v0 = vmov 0   ;;  %v34_v1 = vld [vmem:[%s216_s1] sm:$0xff]  ;;  %v33_v2 = vld [vmem:[#allocation2 + $0x8] sm:$0xff]  ;;  %v35_v4 = vlaneseq  ;;  %vm43_vm0 = vcmask 130048  }
   0x7   :  { %124 = vset.pattern.permute.xlu0 %v180_v0  ;;  %61 = vmatpush.msra.mxu0 %v33_v2  ;;  %v32_v3 = vld [vmem:[#allocation2] sm:$0xff]  ;;  %v181_v7 = vmov 0.0   ;;  %vm80_vm2 = vcmask 7168   ;;  %s104_s24 = sshll.u32 %s218_s3, 4  ;;  %s105_s24 = int_to_ptr.hbm [resolvable:$true] %s104_s24 }
   0x8   :  { %38 = vperm.xlu0 %124, %v34_v1   ;;  %v36_v5 = vand.u32 127, %v35_v4  ;;  %v31_v9 = vld [vmem:[%s215_s0] sm:$0xff]  ;;  %v75_v24 = vshrl.u32 %v35_v4, 7  ;;  %s182_s0 = smov [#allocation5]  }
   0x9   :  { %62 = vmatpush.msra.mxu0 %v32_v3  ;;  %s102_s1 = sshll.u32 %s182_s0, 4  ;;  %s103_s1 = int_to_ptr.vmem [resolvable:$true] %s102_s1 }
   0xa   :  { %vm91_vm3 = vcmp.eq.s32.totalorder %v75_v24, 0  ;;  %vm92_vm4 = vcmp.eq.s32.totalorder %v36_v5, 0 }
   0xb   :  { %vm93_vm5 = vmand %vm91_vm3, %vm92_vm4 }
  0x7a   :  { %v39_v6 = vpop.permute.xlu0 %38 }
  0x7b   :  { %vm40_vm1 = vcmp.eq.s32.totalorder %v39_v6, %v36_v5 }
  0x7c   :  { %v114_v8 = vsel %vm40_vm1, 1.0, %v181_v7 }
  0x7d   :  { %115 = vmatmul.msk.f32.vlgmr.msra.gmra.mxu0 %vm43_vm0, %v114_v8 }
  0xfa   :  { %v64_v10 = vpop.f32.mrf.mxu0 }
  0xfb   :  { %v67_v11 = vsub.f32 %v31_v9, %v64_v10 }
  0xfd   :  { %v68_v12 = vmul.f32 %v67_v11, %v67_v11 }
  0xff   :  { %69 = vadd.xlane.f32.xlu0 %v68_v12 }
 0x172   :  { %v70_v13 = vpop.xlane.xlu0 %69 }
 0x173   :  { %v71_v14 = vmax.f32 %v70_v13, 1e-12 }
 0x175   :  { %v72_v15 = vmin.f32 %v71_v14, 1e+12 }
 0x177   :  { %v81_v16 = vsel %vm80_vm2, %v72_v15, 0.0 }
 0x178   :  { %82 = vadd.xlane.f32.xlu1 %v81_v16 }
 0x1eb   :  { %v83_v17 = vpop.xlane.xlu1 %82 }
 0x1ec   :  { %v84_v18 = vrot.slane %v83_v17, 4 }
 0x1ee   :  { %v85_v19 = vadd.f32 %v84_v18, %v83_v17 }
 0x1f0   :  { %v86_v20 = vrot.slane %v85_v19, 2 }
 0x1f2   :  { %v87_v21 = vadd.f32 %v86_v20, %v85_v19 }
 0x1f4   :  { %v88_v22 = vrot.slane %v87_v21, 1 }
 0x1f6   :  { %v89_v23 = vadd.f32 %v88_v22, %v87_v21 }
 0x1f8   :  { %116 = vpush %v89_v23 }
 0x229   :  { %s117_s25 = spop %116 }
 0x22a   :  { %v94_v25 = vstv %s117_s25 }
 0x22b   :  { %v95_v26 = vsel %vm93_vm5, %v94_v25, 0.0 }
 0x22c   :  { %96 = vst [vmem:[#allocation5] sm:$0xff] %v95_v26 }
 0x22d   :  { %107 = dma.vmem_to_hbm [thread:$0]  %s103_s1, 128, %s105_s24, [#allocation4]  }
 0x22e   :  { %175 = dma.done.wait [#allocation4], 128  }
 0x22f   :  { %176 = vsyncadd [#allocation4], 4294967168 }
 0x230   :  { %112 = vsyncpa [#allocation3], 1 }
 0x231   :  { %113 = vsyncpa [#allocation4], 1 }

</bundles_post_ra>
